<compile_context>
chip_gen: v5e
topology: v5e:2x2
jax: 0.10.0
libtpu: 0.0.40
codegen_flags: <defaults>
</compile_context>

<pallas_src>
import functools

import jax
import jax.numpy as jnp
from jax.experimental import pallas as pl
from jax.experimental.pallas import tpu as pltpu


OUT_PAD = 128  # lane-dense padded decoder output width


# ----------------------------- Fused Pallas kernel ----------------------------- #

def _lstmt_step_kernel(tok_ref, state0_ref, emb_ref, wcat_ref, b_ref,
                       wdec_ref, bdec_ref,
                       out_ref, state_ref):
    """One teacher-forced timestep of: embedding lookup + L LSTM cells + decoder.

    Grid axis 0 = timestep ("arbitrary"): weights are resident via constant
    index_maps; the packed (B, 2*L*H) state slab is the carried recurrence state.
    """
    t = pl.program_id(0)
    L = wcat_ref.shape[0]
    H = wdec_ref.shape[0]
    B = state0_ref.shape[0]
    Vp = emb_ref.shape[0]

    # Initialize the resident state slab from the provided hidden state.
    @pl.when(t == 0)
    def _():
        state_ref[...] = state0_ref[...]

    # ---- Embedding lookup as a lane-dense one-hot matmul (exact for f32) ----
    tok = tok_ref[0]                                                # (B, 1) int32
    lane = jax.lax.broadcasted_iota(jnp.int32, (B, Vp), 1)          # (B, Vp)
    onehot = (lane == tok).astype(jnp.float32)                      # (B, Vp)
    x = jnp.dot(onehot, emb_ref[...],
                preferred_element_type=jnp.float32)                 # (B, H)

    # ---- Multi-layer LSTM cell, statically unrolled over layers ----
    for layer in range(L):
        off = layer * 2 * H
        h = state_ref[:, off:off + H]                               # (B, H)
        c = state_ref[:, off + H:off + 2 * H]                       # (B, H)

        w = wcat_ref[layer]                                         # (2H, 4H)
        gates = (jnp.dot(x, w[:H, :], preferred_element_type=jnp.float32)
                 + jnp.dot(h, w[H:, :], preferred_element_type=jnp.float32)
                 + b_ref[layer])                                    # (B, 4H)

        # Full-width nonlinearities (VPU/EUP), then slice gates [i, f, g, o].
        s = jax.nn.sigmoid(gates)
        tg = jnp.tanh(gates)
        i_g = s[:, 0 * H:1 * H]
        f_g = s[:, 1 * H:2 * H]
        o_g = s[:, 3 * H:4 * H]
        g_g = tg[:, 2 * H:3 * H]

        c_new = f_g * c + i_g * g_g
        h_new = o_g * jnp.tanh(c_new)

        state_ref[:, off:off + H] = h_new
        state_ref[:, off + H:off + 2 * H] = c_new
        x = h_new                                                   # feed next layer

    # ---- Decoder: zero-padded to OUT_PAD lanes -> full-width unmasked store ----
    y = jnp.dot(x, wdec_ref[...], preferred_element_type=jnp.float32) + bdec_ref[...]
    out_ref[0] = y.astype(out_ref.dtype)


# --------------------------------- Wrappers ------------------------------------ #

@functools.partial(jax.jit, static_argnames=("out_dim",))
def lstmt_forward_seq(tokens_tb, hidden, params, out_dim):
    """Run T teacher-forced steps (== T sequential LSTMt.forward calls) in one launch.

    tokens_tb: int32 (T, B) token ids.
    hidden: (h0, c0), each (num_layers, B, H).
    Returns (decoder_out (T, B, out_dim), (h_n, c_n)).
    """
    h0, c0 = hidden
    L, B, H = h0.shape
    T = tokens_tb.shape[0]
    tok = tokens_tb.reshape(T, B, 1).astype(jnp.int32)

    # Packed lane-dense initial state: per layer [h | c] -> (B, 2*L*H).
    state0 = jnp.concatenate(
        [jnp.concatenate([h0[l], c0[l]], axis=-1) for l in range(L)], axis=-1)
    SW = 2 * L * H

    emb = params["embedding_pad"]      # (Vp, H), vocab zero-padded to mult of 128
    wcat = params["w_cat"]             # (L, 2H, 4H)
    b = params["b"]                    # (L, 1, 4H)
    wdec = params["w_dec_pad"]         # (H, OUT_PAD)
    bdec = params["b_dec_pad"]         # (1, OUT_PAD)

    out_pad, state = pl.pallas_call(
        _lstmt_step_kernel,
        out_shape=(
            jax.ShapeDtypeStruct((T, B, OUT_PAD), jnp.float32),
            jax.ShapeDtypeStruct((B, SW), jnp.float32),
        ),
        grid_spec=pltpu.PrefetchScalarGridSpec(
            num_scalar_prefetch=0,
            grid=(T,),
            in_specs=[
                pl.BlockSpec((1, B, 1), lambda t: (t, 0, 0)),       # tokens[t]
                pl.BlockSpec((B, SW), lambda t: (0, 0)),            # initial state
                pl.BlockSpec(emb.shape, lambda t: (0, 0)),          # resident weights
                pl.BlockSpec(wcat.shape, lambda t: (0, 0, 0)),
                pl.BlockSpec(b.shape, lambda t: (0, 0, 0)),
                pl.BlockSpec(wdec.shape, lambda t: (0, 0)),
                pl.BlockSpec(bdec.shape, lambda t: (0, 0)),
            ],
            out_specs=(
                pl.BlockSpec((1, B, OUT_PAD), lambda t: (t, 0, 0)),  # per-step logits
                pl.BlockSpec((B, SW), lambda t: (0, 0)),             # carried state
            ),
        ),
        compiler_params=pltpu.CompilerParams(
            dimension_semantics=("arbitrary",)),                     # sequential time
    )(tok, state0, emb, wcat, b, wdec, bdec)

    out = out_pad[:, :, :out_dim]
    state_r = state.reshape(B, L, 2, H)
    h_n = jnp.transpose(state_r[:, :, 0, :], (1, 0, 2))
    c_n = jnp.transpose(state_r[:, :, 1, :], (1, 0, 2))
    return out, (h_n, c_n)


def lstmt_forward(tokens, hidden, params, out_dim):
    """Mirrors LSTMt.forward(embeds, hidden) for a single step (seq_len == 1)."""
    out_seq, hc = lstmt_forward_seq(tokens.reshape(1, -1), hidden, params, out_dim)
    return out_seq[0], hc


# ----------------------------- Pure-JAX reference ------------------------------- #

def lstmt_forward_seq_ref(tokens_tb, hidden, params):
    h, c = hidden                       # each (L, B, H)
    L, _, H = h.shape
    outs = []
    for t in range(tokens_tb.shape[0]):
        x = params["embedding"][tokens_tb[t]]                        # (B, H)
        h_list, c_list = [], []
        for layer in range(L):
            w = params["w_cat"][layer]
            gates = x @ w[:H] + h[layer] @ w[H:] + params["b"][layer]
            i = jax.nn.sigmoid(gates[:, 0 * H:1 * H])
            f = jax.nn.sigmoid(gates[:, 1 * H:2 * H])
            g = jnp.tanh(gates[:, 2 * H:3 * H])
            o = jax.nn.sigmoid(gates[:, 3 * H:4 * H])
            c_l = f * c[layer] + i * g
            h_l = o * jnp.tanh(c_l)
            h_list.append(h_l)
            c_list.append(c_l)
            x = h_l
        h = jnp.stack(h_list)
        c = jnp.stack(c_list)
        outs.append(x @ params["w_dec_t"] + params["b_dec"])
    return jnp.stack(outs), (h, c)


# ----------------------------------- Main ---------------------------------------- #

if __name__ == "__main__":
    # Module hyperparameters (small, consistent with the forward).
    vocab_size = 100      # nn.Embedding(embedding_dim, hidden_dim) -> num_embeddings
    hidden_dim = 32
    output_dim = 16
    num_layers = 2
    batch = 8
    seq_len = 8           # timesteps fused into one launch

    key = jax.random.PRNGKey(0)
    keys = jax.random.split(key, 3 + 4 * num_layers)

    bound = 1.0 / jnp.sqrt(jnp.float32(hidden_dim))

    embedding = jax.random.normal(keys[0], (vocab_size, hidden_dim), jnp.float32)
    vocab_pad = ((vocab_size + 127) // 128) * 128
    embedding_pad = jnp.zeros((vocab_pad, hidden_dim), jnp.float32).at[:vocab_size].set(embedding)

    w_cat_list, b_list = [], []
    for layer in range(num_layers):
        k_ih, k_hh, k_bi, k_bh = keys[3 + 4 * layer: 3 + 4 * (layer + 1)]
        # PyTorch W_ih_l: (4H, in), W_hh_l: (4H, H); pre-transpose & concat along K.
        w_ih = jax.random.uniform(k_ih, (4 * hidden_dim, hidden_dim),
                                  jnp.float32, -bound, bound)
        w_hh = jax.random.uniform(k_hh, (4 * hidden_dim, hidden_dim),
                                  jnp.float32, -bound, bound)
        b_ih = jax.random.uniform(k_bi, (4 * hidden_dim,), jnp.float32, -bound, bound)
        b_hh = jax.random.uniform(k_bh, (4 * hidden_dim,), jnp.float32, -bound, bound)
        w_cat_list.append(jnp.concatenate([w_ih.T, w_hh.T], axis=0))   # (2H, 4H)
        b_list.append((b_ih + b_hh).reshape(1, 4 * hidden_dim))        # (1, 4H)

    w_dec = jax.random.uniform(keys[1], (output_dim, hidden_dim),
                               jnp.float32, -bound, bound)
    b_dec = jax.random.uniform(keys[2], (output_dim,), jnp.float32, -bound, bound)

    w_dec_pad = jnp.zeros((hidden_dim, OUT_PAD), jnp.float32).at[:, :output_dim].set(w_dec.T)
    b_dec_pad = jnp.zeros((1, OUT_PAD), jnp.float32).at[:, :output_dim].set(b_dec)

    params = {
        "embedding": embedding,                  # (V, H)      (reference only)
        "embedding_pad": embedding_pad,          # (Vp, H)     kernel
        "w_cat": jnp.stack(w_cat_list),          # (L, 2H, 4H)
        "b": jnp.stack(b_list),                  # (L, 1, 4H)
        "w_dec_pad": w_dec_pad,                  # (H, 128)    kernel
        "b_dec_pad": b_dec_pad,                  # (1, 128)    kernel
        "w_dec_t": jnp.asarray(w_dec.T),         # (H, O)      (reference only)
        "b_dec": jnp.asarray(b_dec.reshape(1, output_dim)),
    }

    # Inputs: token ids per step + zero-initialized hidden state (init_hidden).
    tokens_seq = jax.random.randint(jax.random.PRNGKey(42), (seq_len, batch),
                                    0, vocab_size, dtype=jnp.int32)
    h0 = jnp.zeros((num_layers, batch, hidden_dim), jnp.float32)
    c0 = jnp.zeros((num_layers, batch, hidden_dim), jnp.float32)

    # --- Multi-step (time loop fused in-kernel) ---
    out_seq, (h_n, c_n) = lstmt_forward_seq(tokens_seq, (h0, c0), params,
                                            out_dim=output_dim)
    out_seq = jax.block_until_ready(out_seq)
    h_n = jax.block_until_ready(h_n)
    c_n = jax.block_until_ready(c_n)

    out_ref, (h_ref, c_ref) = lstmt_forward_seq_ref(tokens_seq, (h0, c0), params)
    assert out_seq.shape == (seq_len, batch, output_dim)
    assert h_n.shape == (num_layers, batch, hidden_dim)
    assert c_n.shape == (num_layers, batch, hidden_dim)
    assert jnp.allclose(out_seq, out_ref, atol=1e-5, rtol=1e-5)
    assert jnp.allclose(h_n, h_ref, atol=1e-5, rtol=1e-5)
    assert jnp.allclose(c_n, c_ref, atol=1e-5, rtol=1e-5)

    # --- Single-step path (exact LSTMt.forward semantics) ---
    out1, (h1, c1) = lstmt_forward(tokens_seq[0], (h0, c0), params, out_dim=output_dim)
    out1 = jax.block_until_ready(out1)
    out1_ref, (h1_ref, c1_ref) = lstmt_forward_seq_ref(tokens_seq[:1], (h0, c0), params)
    assert out1.shape == (batch, output_dim)
    assert jnp.allclose(out1, out1_ref[0], atol=1e-5, rtol=1e-5)
    assert jnp.allclose(h1, h1_ref, atol=1e-5, rtol=1e-5)
    assert jnp.allclose(c1, c1_ref, atol=1e-5, rtol=1e-5)

    print("KERNEL_OK")
</pallas_src>

<mosaic_0001>
module attributes {stable_mosaic.version = 11 : i64} {
  func.func @_lstmt_step_kernel(%arg0: i32, %arg1: memref<1x8x1xi32, #tpu.memory_space<vmem>>, %arg2: memref<8x128xf32, #tpu.memory_space<vmem>>, %arg3: memref<128x32xf32, #tpu.memory_space<vmem>>, %arg4: memref<2x64x128xf32, #tpu.memory_space<vmem>>, %arg5: memref<2x1x128xf32, #tpu.memory_space<vmem>>, %arg6: memref<32x128xf32, #tpu.memory_space<vmem>>, %arg7: memref<1x128xf32, #tpu.memory_space<vmem>>, %arg8: memref<1x8x128xf32, #tpu.memory_space<vmem>>, %arg9: memref<8x128xf32, #tpu.memory_space<vmem>>) attributes {dimension_semantics = [#tpu.dimension_semantics<arbitrary>], iteration_bounds = array<i64: 8>, scalar_prefetch = 0 : i64, scratch_operands = 0 : i64, tpu.core_type = #tpu.core_type<tc>, window_params = [{transform_indices = @transform_0, window_bounds = array<i64: 1, 8, 1>}, {pipeline_mode = #tpu.pipeline_mode<synchronous>, transform_indices = @transform_1, window_bounds = array<i64: 8, 128>}, {pipeline_mode = #tpu.pipeline_mode<synchronous>, transform_indices = @transform_2, window_bounds = array<i64: 128, 32>}, {pipeline_mode = #tpu.pipeline_mode<synchronous>, transform_indices = @transform_3, window_bounds = array<i64: 2, 64, 128>}, {pipeline_mode = #tpu.pipeline_mode<synchronous>, transform_indices = @transform_4, window_bounds = array<i64: 2, 1, 128>}, {pipeline_mode = #tpu.pipeline_mode<synchronous>, transform_indices = @transform_5, window_bounds = array<i64: 32, 128>}, {pipeline_mode = #tpu.pipeline_mode<synchronous>, transform_indices = @transform_6, window_bounds = array<i64: 1, 128>}, {transform_indices = @transform_7, window_bounds = array<i64: 1, 8, 128>}, {pipeline_mode = #tpu.pipeline_mode<synchronous>, transform_indices = @transform_8, window_bounds = array<i64: 8, 128>}]} {
    %c0_i32 = arith.constant 0 : i32
    %0 = arith.cmpi eq, %arg0, %c0_i32 : i32
    %1 = arith.extui %0 : i1 to i32
    %c0_i32_0 = arith.constant 0 : i32
    %2 = arith.cmpi ne, %1, %c0_i32_0 : i32
    scf.if %2 {
      %c0_43 = arith.constant 0 : index
      %c0_44 = arith.constant 0 : index
      %80 = vector.load %arg2[%c0_43, %c0_44] : memref<8x128xf32, #tpu.memory_space<vmem>>, vector<8x128xf32>
      %c0_45 = arith.constant 0 : index
      %c0_46 = arith.constant 0 : index
      %81 = vector.load %arg9[%c0_45, %c0_46] : memref<8x128xf32, #tpu.memory_space<vmem>>, vector<8x128xf32>
      tpu.vector_store %arg9[%c0_45, %c0_46], %80 {strides = array<i32>} : memref<8x128xf32, #tpu.memory_space<vmem>>, vector<8x128xf32>,
    } else {
    }
    %c0 = arith.constant 0 : index
    %c0_1 = arith.constant 0 : index
    %c0_2 = arith.constant 0 : index
    %3 = vector.load %arg1[%c0, %c0_1, %c0_2] : memref<1x8x1xi32, #tpu.memory_space<vmem>>, vector<1x8x1xi32>
    %4 = vector.shape_cast %3 : vector<1x8x1xi32> to vector<8x1xi32>
    %5 = tpu.iota {dimensions = array<i32: 1>} : vector<8x128xi32>
    %6 = vector.broadcast %4 : vector<8x1xi32> to vector<8x128xi32>
    %7 = arith.cmpi eq, %5, %6 : vector<8x128xi32>
    %8 = arith.extui %7 : vector<8x128xi1> to vector<8x128xi32>
    %9 = arith.sitofp %8 : vector<8x128xi32> to vector<8x128xf32>
    %c0_3 = arith.constant 0 : index
    %c0_4 = arith.constant 0 : index
    %10 = vector.load %arg3[%c0_3, %c0_4] : memref<128x32xf32, #tpu.memory_space<vmem>>, vector<128x32xf32>
    %cst = arith.constant dense<0.000000e+00> : vector<8x32xf32>
    %11 = tpu.matmul %9, %10, %cst {dimension_numbers = #tpu.dot_dimension_numbers<[1], [0], [0], [1], [0, 0, 1, 1], [], []>} : vector<8x128xf32>, vector<128x32xf32>, vector<8x32xf32> -> vector<8x32xf32>
    %c0_5 = arith.constant 0 : index
    %c0_6 = arith.constant 0 : index
    %12 = vector.load %arg9[%c0_5, %c0_6] : memref<8x128xf32, #tpu.memory_space<vmem>>, vector<8x32xf32>
    %c0_7 = arith.constant 0 : index
    %c32 = arith.constant 32 : index
    %13 = vector.load %arg9[%c0_7, %c32] : memref<8x128xf32, #tpu.memory_space<vmem>>, vector<8x32xf32>
    %c0_8 = arith.constant 0 : index
    %c0_9 = arith.constant 0 : index
    %c0_10 = arith.constant 0 : index
    %14 = vector.load %arg4[%c0_8, %c0_9, %c0_10] : memref<2x64x128xf32, #tpu.memory_space<vmem>>, vector<1x64x128xf32>
    %15 = vector.shape_cast %14 : vector<1x64x128xf32> to vector<64x128xf32>
    %16 = vector.extract_strided_slice %15 {offsets = [0, 0], sizes = [32, 128], strides = [1, 1]} : vector<64x128xf32> to vector<32x128xf32>
    %cst_11 = arith.constant dense<0.000000e+00> : vector<8x128xf32>
    %17 = tpu.matmul %11, %16, %cst_11 {dimension_numbers = #tpu.dot_dimension_numbers<[1], [0], [0], [1], [0, 0, 1, 1], [], []>} : vector<8x32xf32>, vector<32x128xf32>, vector<8x128xf32> -> vector<8x128xf32>
    %18 = vector.extract_strided_slice %15 {offsets = [32, 0], sizes = [32, 128], strides = [1, 1]} : vector<64x128xf32> to vector<32x128xf32>
    %cst_12 = arith.constant dense<0.000000e+00> : vector<8x128xf32>
    %19 = tpu.matmul %12, %18, %cst_12 {dimension_numbers = #tpu.dot_dimension_numbers<[1], [0], [0], [1], [0, 0, 1, 1], [], []>} : vector<8x32xf32>, vector<32x128xf32>, vector<8x128xf32> -> vector<8x128xf32>
    %20 = arith.addf %17, %19 : vector<8x128xf32>
    %c0_13 = arith.constant 0 : index
    %c0_14 = arith.constant 0 : index
    %c0_15 = arith.constant 0 : index
    %21 = vector.load %arg5[%c0_13, %c0_14, %c0_15] : memref<2x1x128xf32, #tpu.memory_space<vmem>>, vector<1x1x128xf32>
    %22 = vector.shape_cast %21 : vector<1x1x128xf32> to vector<1x128xf32>
    %23 = vector.broadcast %22 : vector<1x128xf32> to vector<8x128xf32>
    %24 = arith.addf %20, %23 : vector<8x128xf32>
    %25 = arith.negf %24 : vector<8x128xf32>
    %26 = math.exp %25 : vector<8x128xf32>
    %cst_16 = arith.constant 1.000000e+00 : f32
    %27 = vector.broadcast %cst_16 : f32 to vector<8x128xf32>
    %28 = arith.addf %27, %26 : vector<8x128xf32>
    %29 = arith.divf %27, %28 : vector<8x128xf32>
    %30 = math.tanh %24 : vector<8x128xf32>
    %31 = vector.extract_strided_slice %29 {offsets = [0, 0], sizes = [8, 32], strides = [1, 1]} : vector<8x128xf32> to vector<8x32xf32>
    %32 = vector.extract_strided_slice %29 {offsets = [0, 32], sizes = [8, 32], strides = [1, 1]} : vector<8x128xf32> to vector<8x32xf32>
    %33 = vector.extract_strided_slice %29 {offsets = [0, 96], sizes = [8, 32], strides = [1, 1]} : vector<8x128xf32> to vector<8x32xf32>
    %34 = vector.extract_strided_slice %30 {offsets = [0, 64], sizes = [8, 32], strides = [1, 1]} : vector<8x128xf32> to vector<8x32xf32>
    %35 = arith.mulf %32, %13 : vector<8x32xf32>
    %36 = arith.mulf %31, %34 : vector<8x32xf32>
    %37 = arith.addf %35, %36 : vector<8x32xf32>
    %38 = math.tanh %37 : vector<8x32xf32>
    %39 = arith.mulf %33, %38 : vector<8x32xf32>
    %c0_17 = arith.constant 0 : index
    %c0_18 = arith.constant 0 : index
    %40 = vector.load %arg9[%c0_17, %c0_18] : memref<8x128xf32, #tpu.memory_space<vmem>>, vector<8x32xf32>
    tpu.vector_store %arg9[%c0_17, %c0_18], %39 {strides = array<i32>} : memref<8x128xf32, #tpu.memory_space<vmem>>, vector<8x32xf32>,
    %c0_19 = arith.constant 0 : index
    %c32_20 = arith.constant 32 : index
    %41 = vector.load %arg9[%c0_19, %c32_20] : memref<8x128xf32, #tpu.memory_space<vmem>>, vector<8x32xf32>
    tpu.vector_store %arg9[%c0_19, %c32_20], %37 {strides = array<i32>} : memref<8x128xf32, #tpu.memory_space<vmem>>, vector<8x32xf32>,
    %c0_21 = arith.constant 0 : index
    %c64 = arith.constant 64 : index
    %42 = vector.load %arg9[%c0_21, %c64] : memref<8x128xf32, #tpu.memory_space<vmem>>, vector<8x32xf32>
    %c0_22 = arith.constant 0 : index
    %c96 = arith.constant 96 : index
    %43 = vector.load %arg9[%c0_22, %c96] : memref<8x128xf32, #tpu.memory_space<vmem>>, vector<8x32xf32>
    %c1 = arith.constant 1 : index
    %c0_23 = arith.constant 0 : index
    %c0_24 = arith.constant 0 : index
    %44 = vector.load %arg4[%c1, %c0_23, %c0_24] : memref<2x64x128xf32, #tpu.memory_space<vmem>>, vector<1x64x128xf32>
    %45 = vector.shape_cast %44 : vector<1x64x128xf32> to vector<64x128xf32>
    %46 = vector.extract_strided_slice %45 {offsets = [0, 0], sizes = [32, 128], strides = [1, 1]} : vector<64x128xf32> to vector<32x128xf32>
    %cst_25 = arith.constant dense<0.000000e+00> : vector<8x128xf32>
    %47 = tpu.matmul %39, %46, %cst_25 {dimension_numbers = #tpu.dot_dimension_numbers<[1], [0], [0], [1], [0, 0, 1, 1], [], []>} : vector<8x32xf32>, vector<32x128xf32>, vector<8x128xf32> -> vector<8x128xf32>
    %48 = vector.extract_strided_slice %45 {offsets = [32, 0], sizes = [32, 128], strides = [1, 1]} : vector<64x128xf32> to vector<32x128xf32>
    %cst_26 = arith.constant dense<0.000000e+00> : vector<8x128xf32>
    %49 = tpu.matmul %42, %48, %cst_26 {dimension_numbers = #tpu.dot_dimension_numbers<[1], [0], [0], [1], [0, 0, 1, 1], [], []>} : vector<8x32xf32>, vector<32x128xf32>, vector<8x128xf32> -> vector<8x128xf32>
    %50 = arith.addf %47, %49 : vector<8x128xf32>
    %c1_27 = arith.constant 1 : index
    %c0_28 = arith.constant 0 : index
    %c0_29 = arith.constant 0 : index
    %51 = vector.load %arg5[%c1_27, %c0_28, %c0_29] : memref<2x1x128xf32, #tpu.memory_space<vmem>>, vector<1x1x128xf32>
    %52 = vector.shape_cast %51 : vector<1x1x128xf32> to vector<1x128xf32>
    %53 = vector.broadcast %52 : vector<1x128xf32> to vector<8x128xf32>
    %54 = arith.addf %50, %53 : vector<8x128xf32>
    %55 = arith.negf %54 : vector<8x128xf32>
    %56 = math.exp %55 : vector<8x128xf32>
    %cst_30 = arith.constant 1.000000e+00 : f32
    %57 = vector.broadcast %cst_30 : f32 to vector<8x128xf32>
    %58 = arith.addf %57, %56 : vector<8x128xf32>
    %59 = arith.divf %57, %58 : vector<8x128xf32>
    %60 = math.tanh %54 : vector<8x128xf32>
    %61 = vector.extract_strided_slice %59 {offsets = [0, 0], sizes = [8, 32], strides = [1, 1]} : vector<8x128xf32> to vector<8x32xf32>
    %62 = vector.extract_strided_slice %59 {offsets = [0, 32], sizes = [8, 32], strides = [1, 1]} : vector<8x128xf32> to vector<8x32xf32>
    %63 = vector.extract_strided_slice %59 {offsets = [0, 96], sizes = [8, 32], strides = [1, 1]} : vector<8x128xf32> to vector<8x32xf32>
    %64 = vector.extract_strided_slice %60 {offsets = [0, 64], sizes = [8, 32], strides = [1, 1]} : vector<8x128xf32> to vector<8x32xf32>
    %65 = arith.mulf %62, %43 : vector<8x32xf32>
    %66 = arith.mulf %61, %64 : vector<8x32xf32>
    %67 = arith.addf %65, %66 : vector<8x32xf32>
    %68 = math.tanh %67 : vector<8x32xf32>
    %69 = arith.mulf %63, %68 : vector<8x32xf32>
    %c0_31 = arith.constant 0 : index
    %c64_32 = arith.constant 64 : index
    %70 = vector.load %arg9[%c0_31, %c64_32] : memref<8x128xf32, #tpu.memory_space<vmem>>, vector<8x32xf32>
    tpu.vector_store %arg9[%c0_31, %c64_32], %69 {strides = array<i32>} : memref<8x128xf32, #tpu.memory_space<vmem>>, vector<8x32xf32>,
    %c0_33 = arith.constant 0 : index
    %c96_34 = arith.constant 96 : index
    %71 = vector.load %arg9[%c0_33, %c96_34] : memref<8x128xf32, #tpu.memory_space<vmem>>, vector<8x32xf32>
    tpu.vector_store %arg9[%c0_33, %c96_34], %67 {strides = array<i32>} : memref<8x128xf32, #tpu.memory_space<vmem>>, vector<8x32xf32>,
    %c0_35 = arith.constant 0 : index
    %c0_36 = arith.constant 0 : index
    %72 = vector.load %arg6[%c0_35, %c0_36] : memref<32x128xf32, #tpu.memory_space<vmem>>, vector<32x128xf32>
    %cst_37 = arith.constant dense<0.000000e+00> : vector<8x128xf32>
    %73 = tpu.matmul %69, %72, %cst_37 {dimension_numbers = #tpu.dot_dimension_numbers<[1], [0], [0], [1], [0, 0, 1, 1], [], []>} : vector<8x32xf32>, vector<32x128xf32>, vector<8x128xf32> -> vector<8x128xf32>
    %c0_38 = arith.constant 0 : index
    %c0_39 = arith.constant 0 : index
    %74 = vector.load %arg7[%c0_38, %c0_39] : memref<1x128xf32, #tpu.memory_space<vmem>>, vector<1x128xf32>
    %75 = vector.broadcast %74 : vector<1x128xf32> to vector<8x128xf32>
    %76 = arith.addf %73, %75 : vector<8x128xf32>
    %c0_40 = arith.constant 0 : index
    %c0_41 = arith.constant 0 : index
    %c0_42 = arith.constant 0 : index
    %77 = vector.load %arg8[%c0_40, %c0_41, %c0_42] : memref<1x8x128xf32, #tpu.memory_space<vmem>>, vector<1x8x128xf32>
    %78 = vector.shape_cast %77 : vector<1x8x128xf32> to vector<8x128xf32>
    %79 = vector.shape_cast %76 : vector<8x128xf32> to vector<1x8x128xf32>
    tpu.vector_store %arg8[%c0_40, %c0_41, %c0_42], %79 {strides = array<i32>} : memref<1x8x128xf32, #tpu.memory_space<vmem>>, vector<1x8x128xf32>,
    return
  }
  func.func @transform_0(%arg0: i32) -> (i32, i32, i32) {
    %c0_i32 = arith.constant 0 : i32
    %c0_i32_0 = arith.constant 0 : i32
    %c0_i32_1 = arith.constant 0 : i32
    return %arg0, %c0_i32, %c0_i32_0 : i32, i32, i32
  }
  func.func @transform_1(%arg0: i32) -> (i32, i32) {
    %c0_i32 = arith.constant 0 : i32
    %c0_i32_0 = arith.constant 0 : i32
    %c0_i32_1 = arith.constant 0 : i32
    return %c0_i32, %c0_i32_0 : i32, i32
  }
  func.func @transform_2(%arg0: i32) -> (i32, i32) {
    %c0_i32 = arith.constant 0 : i32
    %c0_i32_0 = arith.constant 0 : i32
    %c0_i32_1 = arith.constant 0 : i32
    return %c0_i32, %c0_i32_0 : i32, i32
  }
  func.func @transform_3(%arg0: i32) -> (i32, i32, i32) {
    %c0_i32 = arith.constant 0 : i32
    %c0_i32_0 = arith.constant 0 : i32
    %c0_i32_1 = arith.constant 0 : i32
    %c0_i32_2 = arith.constant 0 : i32
    return %c0_i32, %c0_i32_0, %c0_i32_1 : i32, i32, i32
  }
  func.func @transform_4(%arg0: i32) -> (i32, i32, i32) {
    %c0_i32 = arith.constant 0 : i32
    %c0_i32_0 = arith.constant 0 : i32
    %c0_i32_1 = arith.constant 0 : i32
    %c0_i32_2 = arith.constant 0 : i32
    return %c0_i32, %c0_i32_0, %c0_i32_1 : i32, i32, i32
  }
  func.func @transform_5(%arg0: i32) -> (i32, i32) {
    %c0_i32 = arith.constant 0 : i32
    %c0_i32_0 = arith.constant 0 : i32
    %c0_i32_1 = arith.constant 0 : i32
    return %c0_i32, %c0_i32_0 : i32, i32
  }
  func.func @transform_6(%arg0: i32) -> (i32, i32) {
    %c0_i32 = arith.constant 0 : i32
    %c0_i32_0 = arith.constant 0 : i32
    %c0_i32_1 = arith.constant 0 : i32
    return %c0_i32, %c0_i32_0 : i32, i32
  }
  func.func @transform_7(%arg0: i32) -> (i32, i32, i32) {
    %c0_i32 = arith.constant 0 : i32
    %c0_i32_0 = arith.constant 0 : i32
    %c0_i32_1 = arith.constant 0 : i32
    return %arg0, %c0_i32, %c0_i32_0 : i32, i32, i32
  }
  func.func @transform_8(%arg0: i32) -> (i32, i32) {
    %c0_i32 = arith.constant 0 : i32
    %c0_i32_0 = arith.constant 0 : i32
    %c0_i32_1 = arith.constant 0 : i32
    return %c0_i32, %c0_i32_0 : i32, i32
  }
}

</mosaic_0001>

<bundles_post_ra>
// kernel: lstmt_forward_seq.1
= control target key start
LH: loop header
LB: loop body
LE: loop exit
PB: predicated region body
PF: predicated region fallthrough
CT: control target
= control target key end

     0   :  { %14 = vsyncpa [#allocation3], 0  ;;  %s1143_s0 = inlined_call_operand.vmem [shape: s32[8,8,1], index: 0, kind: input, shape index: {}]   ;;  %s1144_s1 = inlined_call_operand.vmem [shape: f32[8,128], index: 1, kind: input, shape index: {}]   ;;  %s1145_s2 = inlined_call_operand.vmem [shape: f32[128,32], index: 2, kind: input, shape index: {}]   ;;  %s1146_s3 = inlined_call_operand.vmem [shape: f32[2,64,128], index: 3, kind: input, shape index: {}]   ;;  %s1147_s4 = inlined_call_operand.vmem [shape: f32[2,1,128], index: 4, kind: input, shape index: {}]   ;;  %s1148_s5 = inlined_call_operand.vmem [shape: f32[32,128], index: 5, kind: input, shape index: {}]   ;;  %s1149_s6 = inlined_call_operand.vmem [shape: f32[1,128], index: 6, kind: input, shape index: {}]   ;;  %s1150_s7 = inlined_call_operand.hbm [shape: f32[8,8,128], index: 7, kind: output, shape index: {0}]   ;;  %s1151_s8 = inlined_call_operand.vmem [shape: f32[8,128], index: 8, kind: output, shape index: {1}]  }
   0x1   :  { %16 = vsyncpa [#allocation3 + $0x1], 0  ;;  %s889_s27 = smov 0   ;;  %s891_s28 = smov 0  }
   0x2   :  { %s893_s29 = smov 0   ;;  %s895_s30 = smov 0  }
   0x3 LB: > { %s910_s9 = sadd.s32 4294967295, %s837_s30   ;;  %s682_s10 = sadd.s32 4294967294, %s837_s30   ;;  %s837_s30 = sphi %s895_s30, %s1159_s30   ;;  %s833_s29 = sphi %s893_s29, %s1158_s29   ;;  %s829_s28 = sphi %s891_s28, %s1157_s28   ;;  %s825_s27 = sphi %s889_s27, %s1156_s27  }
   0x4   : > { %s914_s11 = sadd.s32 1, %s837_s30   ;;  %s181_s12 = sadd.s32 1, %s833_s29 }
   0x5   : > { %s178_s13 = ssub.s32 %s837_s30, %s914_s11  ;;  %p191_p0 = scmp.ne.s32.totalorder %s833_s29, %s829_s28 }
   0x6   : > { %p179_p1 = scmp.eq.s32.totalorder %s178_s13, 0  ;;  %p192_p2 = scmp.eq.s32.totalorder %s910_s9, 7 }
   0x7   : > { %p197_p3 = scmp.ne.s32.totalorder %s829_s28, %s825_s27  ;;  %p198_p4 = scmp.eq.s32.totalorder %s682_s10, 7 }
   0x8   : > { %s925_s14 = scalar_select %p179_p1, %s833_s29, %s181_s12  }
   0x9   : > { %p927_p5 = por %p192_p2, %p191_p0  ;;  %p931_p6 = por %p198_p4, %p197_p3 }
   0xa   : > { %p685_p7 = scmp.ge.s32.totalorder %s837_s30, 1  ;;  %p262_p8 = scmp.lt.s32.totalorder %s837_s30, 9 }
   0xc   : > { %p263_p9 = pnand %p685_p7, %p262_p8 }
   0xd   : > { %s1152_s17 = sand.u32 (!%p263_p9), 1, %s829_s28   ;;  %p295_p10 = scmp.lt.s32.totalorder (!%p263_p9), %s910_s9, 7 }
   0xe   : > { %266 = sbr.rel (%p263_p9) target bundleno = 1692 (0x69c), region = 48  ;;  %s941_s18 = sshll.u32 (!%p263_p9), %s1152_s17, 3 }
   0xf   : > { %s292_s24 = scalar_lea.vmem (!%p263_p9), [#allocation2], %s941_s18  ;;  %p688_p11 = scmp.ne.s32.totalorder (!%p263_p9), %s910_s9, 0 }
  0x13   : > { %s296_s19 = scalar_select %p295_p10, %s910_s9, 7 }
  0x14   : > { %302 = sbr.rel (%p688_p11) target bundleno = 27 (0x1b), region = 52 }
  0x15   : > { %s687_s20 = sshll.u32 %s296_s19, 3 }
  0x16   : > { %s298_s23 = scalar_lea.vmem %s1143_s0, %s687_s20 }
  0x19   : > { %v303_v0 = vld [vmem:[%s1144_s1] sm:$0xff] }
  0x1a   : > { %304 = vst [vmem:[%s1151_s8] sm:$0xff] %v303_v0 }
  0x1b PF: > { %v305_v1 = vld [vmem:[%s298_s23] sm:$0xff]  ;;  %v329_v2 = vld [vmem:[%s1145_s2 + $0x78] sm:$0xff]  ;;  %v328_v3 = vld [vmem:[%s1145_s2 + $0x70] sm:$0xff]  ;;  %v839_v4 = vmov 0   ;;  %v306_v22 = vlaneseq  ;;  %v840_v25 = vmov 1.0   ;;  %vm359_vm1 = vcmask 261120  }
  0x1c   : > { %755 = vset.pattern.permute.xlu0 %v839_v4  ;;  %330 = vmatpush.msra.mxu0 %v329_v2  ;;  %v327_v5 = vld [vmem:[%s1145_s2 + $0x68] sm:$0xff]  ;;  %v326_v6 = vld [vmem:[%s1145_s2 + $0x60] sm:$0xff]  ;;  %v325_v7 = vld [vmem:[%s1145_s2 + $0x58] sm:$0xff]  ;;  %s841_s21 = smov 64   ;;  %s842_s20 = smov 32   ;;  %vm453_vm6 = vcmask 523520  }
  0x1d   : > { %309 = vperm.xlu0 %755, %v305_v1   ;;  %v324_v8 = vld [vmem:[%s1145_s2 + $0x50] sm:$0xff]  ;;  %v323_v9 = vld [vmem:[%s1145_s2 + $0x48] sm:$0xff]  ;;  %v322_v10 = vld [vmem:[%s1145_s2 + $0x40] sm:$0xff]  ;;  %v307_v23 = vand.u32 127, %v306_v22  ;;  %vm560_vm11 = vcmask 785920   ;;  %vm566_vm12 = vcmask 1048320  }
  0x1e   : > { %331 = vmatpush.msra.mxu0 %v328_v3  ;;  %v321_v11 = vld [vmem:[%s1145_s2 + $0x38] sm:$0xff]  ;;  %v320_v12 = vld [vmem:[%s1145_s2 + $0x30] sm:$0xff]  ;;  %v319_v13 = vld [vmem:[%s1145_s2 + $0x28] sm:$0xff]  ;;  %s708_s23 = sshll.u32 %s910_s9, 3  ;;  %s614_s17 = sshll.u32 %s292_s24, 4  ;;  %s615_s17 = int_to_ptr.vmem [resolvable:$true] %s614_s17 }
  0x1f   : > { %v318_v14 = vld [vmem:[%s1145_s2 + $0x20] sm:$0xff]  ;;  %v317_v15 = vld [vmem:[%s1145_s2 + $0x18] sm:$0xff]  ;;  %v316_v16 = vld [vmem:[%s1145_s2 + $0x10] sm:$0xff]  ;;  %s612_s13 = scalar_lea.hbm %s1150_s7, %s708_s23  ;;  %s1155_s25 = sand.u32 1, %s829_s28  }
  0x20   : > { %332 = vmatpush.msra.mxu0 %v327_v5  ;;  %v315_v17 = vld [vmem:[%s1145_s2 + $0x8] sm:$0xff]  ;;  %v314_v18 = vld [vmem:[%s1145_s2] sm:$0xff]  ;;  %v354_v19 = vld [vmem:[%s1146_s3 + $0x18] sm:$0xff]  ;;  %s616_s22 = sshll.u32 %s612_s13, 4  ;;  %s602_s26 = scalar_lea.sflag [#allocation3], %s1155_s25  ;;  %s617_s22 = int_to_ptr.hbm [resolvable:$true] %s616_s22 }
  0x21   : > { %v353_v20 = vld [vmem:[%s1146_s3 + $0x10] sm:$0xff]  ;;  %398 = vmatpush.msra.mxu2 %v354_v19  ;;  %v352_v21 = vld [vmem:[%s1146_s3 + $0x8] sm:$0xff]  ;;  %v358_v26 = vld [vmem:[%s1146_s3 + $0x38] sm:$0xff]  ;;  %s789_s9 = sshra.s32 %s617_s22, 4  ;;  %s795_s12 = scalar_lea.hbm %s1150_s7, 64  ;;  %s790_s9 = int_to_ptr.hbm [resolvable:$true] %s789_s9 }
  0x22   : > { %333 = vmatpush.msra.mxu0 %v326_v6  ;;  %v351_v27 = vld [vmem:[%s1146_s3] sm:$0xff]  ;;  %375 = vmatpush.msra.mxu1 %v358_v26  ;;  %v357_v28 = vld [vmem:[%s1146_s3 + $0x30] sm:$0xff]  ;;  %v356_v29 = vld [vmem:[%s1146_s3 + $0x28] sm:$0xff]  ;;  %s791_s10 = scalar_lea.hbm %s790_s9, 8  ;;  %p796_p1 = scmp.lt.s32.totalorder %s790_s9, %s1150_s7 }
  0x23   : > { %399 = vmatpush.msra.mxu2 %v353_v20  ;;  %v355_v30 = vld [vmem:[%s1146_s3 + $0x20] sm:$0xff]  ;;  %v697_v58 = vld [vmem:[%s1146_s3 + $0x58] sm:$0xff]  ;;  %v696_v59 = vld [vmem:[%s1146_s3 + $0x50] sm:$0xff]  ;;  %p792_p12 = scmp.ne.s32.totalorder %s790_s9, %s791_s10  ;;  %p797_p2 = scmp.lt.s32.totalorder %s795_s12, %s791_s10 }
  0x24   : > { %334 = vmatpush.msra.mxu0 %v325_v7  ;;  %376 = vmatpush.msra.mxu1 %v357_v28  ;;  %v350_v31 = vld [vmem:[%s1151_s8] sm:$0xff]  ;;  %v695_v60 = vld [vmem:[%s1146_s3 + $0x48] sm:$0xff]  ;;  %v701_v0 = vld [vmem:[%s1146_s3 + $0x78] sm:$0xff] }
  0x25   : > { %400 = vmatpush.msra.mxu2 %v352_v21  ;;  %v756_v34 = vld [vmem:[%s1147_s4] ss:$0 sm:$0xff]  ;;  %v700_v1 = vld [vmem:[%s1146_s3 + $0x70] sm:$0xff]  ;;  %482 = vmatpush.msra.mxu3 %v701_v0  ;;  %v699_v2 = vld [vmem:[%s1146_s3 + $0x68] sm:$0xff]  ;;  %p793_p13 = pnand %p792_p12, %p927_p5  ;;  %p798_p3 = por %p797_p2, %p796_p1 }
  0x26   : > { %335 = vmatpush.msra.mxu0 %v324_v8  ;;  %377 = vmatpush.msra.mxu1 %v356_v29  ;;  %v694_v61 = vld [vmem:[%s1146_s3 + $0x40] sm:$0xff] }
  0x27   : > { %401 = vmatpush.msra.mxu2 %v351_v27  ;;  %483 = vmatpush.msra.mxu3 %v700_v1  ;;  %v698_v3 = vld [vmem:[%s1146_s3 + $0x60] sm:$0xff]  ;;  %p794_p0 = pneg %p793_p13 }
  0x28   : > { %336 = vmatpush.msra.mxu0 %v323_v9  ;;  %378 = vmatpush.msra.mxu1 %v355_v30  ;;  %v757_v7 = vld [vmem:[%s1147_s4 + $0x1] ss:$0 sm:$0xff] }
  0x29   : > { %691 = vmatmul.msk.f32.vlgmr.msra.gmra.mxu1 %vm359_vm1, %v350_v31  ;;  %484 = vmatpush.msra.mxu3 %v699_v2  ;;  %p799_p4 = pnand %p798_p3, %p794_p0 }
  0x2a   : > { %337 = vmatpush.msra.mxu0 %v322_v10  ;;  %504 = vmatpush.msrb.mxu1 %v697_v58 }
  0x2b   : > { %485 = vmatpush.msra.mxu3 %v698_v3 }
  0x2c   : > { %338 = vmatpush.msra.mxu0 %v321_v11  ;;  %505 = vmatpush.msrb.mxu1 %v696_v59 }
  0x2e   : > { %339 = vmatpush.msra.mxu0 %v320_v12  ;;  %506 = vmatpush.msrb.mxu1 %v695_v60 }
  0x30   : > { %340 = vmatpush.msra.mxu0 %v319_v13  ;;  %507 = vmatpush.msrb.mxu1 %v694_v61 }
  0x32   : > { %341 = vmatpush.msra.mxu0 %v318_v14 }
  0x34   : > { %342 = vmatpush.msra.mxu0 %v317_v15 }
  0x36   : > { %343 = vmatpush.msra.mxu0 %v316_v16 }
  0x38   : > { %344 = vmatpush.msra.mxu0 %v315_v17 }
  0x3a   : > { %345 = vmatpush.msra.mxu0 %v314_v18 }
  0x8f   : > { %v310_v24 = vpop.permute.xlu0 %309 }
  0x90   : > { %vm311_vm0 = vcmp.eq.s32.totalorder %v307_v23, %v310_v24 }
  0x91   : > { %690 = vmatmul.msk.f32.vlgmr.msra.gmra.mxu0 %vm311_vm0, %v840_v25 }
  0xa6   : > { %v380_v33 = vpop.f32.mrf.mxu1 }
 0x10e   : > { %v347_v32 = vpop.f32.mrf.mxu0 }
 0x10f   : > { %692 = vmatmul.msk.f32.vlgmr.msra.gmra.mxu2 %vm359_vm1, %v347_v32  ;;  %v571_v32 = vld [vmem:[%s1148_s5 + $0x18] sm:$0xff] }
 0x110   : > { %592 = vmatpush.msrb.mxu2 %v571_v32 }
 0x192   : > { %v403_v35 = vpop.f32.mrf.mxu2 }
 0x193   : > { %v404_v36 = vadd.f32 %v403_v35, %v380_v33  ;;  %v570_v33 = vld [vmem:[%s1148_s5 + $0x10] sm:$0xff]  ;;  %v568_v35 = vld [vmem:[%s1148_s5] sm:$0xff] }
 0x194   : > { %593 = vmatpush.msrb.mxu2 %v570_v33 }
 0x195   : > { %v410_v37 = vadd.f32 %v756_v34, %v404_v36  ;;  %v569_v34 = vld [vmem:[%s1148_s5 + $0x8] sm:$0xff] }
 0x196   : > { %594 = vmatpush.msrb.mxu2 %v569_v34 }
 0x197   : > { %759 = vtanh.f32 %v410_v37  ;;  %v693_v39 = vmul.f32 -1.442695, %v410_v37 }
 0x198   : > { %595 = vmatpush.msrb.mxu2 %v568_v35 }
 0x199   : > { %761 = vpow2.f32 %v693_v39 }
 0x19d   : > { %v760_v38 = vpop.eup %759 }
 0x19e   : > { %433 = vrot.lane.b32.xlu0 %v760_v38, %s841_s21 }
 0x19f   : > { %v762_v40 = vpop.eup %761 }
 0x1a0   : > { %v414_v41 = vadd.f32 1.0, %v762_v40 }
 0x1a2   : > { %763 = vrcp.f32 %v414_v41  ;;  %v426_v47 = vand.u32 2147483648, %v414_v41  ;;  %vm420_vm3 = vweird.f32 %v414_v41  ;;  %v424_v48 = vand.u32 2147483647, %v414_v41 }
 0x1a4   : > { %v427_v50 = vor.u32 1.1754944e-38, %v426_v47  ;;  %vm425_vm5 = vcmp.eq.f32.partialorder %v424_v48, 8.507059e+37 }
 0x1a8   : > { %v764_v42 = vpop.eup %763 }
 0x1a9   : > { %v416_v43 = vmul.f32 %v764_v42, %v414_v41  ;;  %vm421_vm2 = vweird.f32 %v764_v42  ;;  %v758_v41 = vld [vmem:[%s1149_s6] ss:$0 sm:$0xff] }
 0x1aa   : > { %vm422_vm4 = vmor %vm420_vm3, %vm421_vm2 }
 0x1ab   : > { %v417_v44 = vsub.f32 1.0, %v416_v43 }
 0x1ad   : > { %v418_v45 = vmul.f32 %v764_v42, %v417_v44 }
 0x1af   : > { %v419_v46 = vadd.f32 %v764_v42, %v418_v45 }
 0x1b1   : > { %v423_v49 = vsel %vm422_vm4, %v764_v42, %v419_v46 }
 0x1b2   : > { %v428_v52 = vsel %vm425_vm5, %v427_v50, %v423_v49 }
 0x1b3   : > { %v431_v54 = vmul.f32 %v428_v52, %v350_v31 }
 0x210   : > { %v434_v51 = vpop.permute.xlu0 %433 }
 0x211   : > { %v436_v53 = vmul.f32 %v434_v51, %v428_v52 }
 0x213   : > { %438 = vrot.lane.b32.xlu1 %v436_v53, %s842_s20 }
 0x285   : > { %v439_v55 = vpop.permute.xlu1 %438 }
 0x286   : > { %v441_v56 = vadd.f32 %v439_v55, %v431_v54 }
 0x288   : > { %765 = vtanh.f32 %v441_v56 }
 0x28e   : > { %v766_v57 = vpop.eup %765 }
 0x28f   : > { %444 = vrot.lane.b32.xlu1 %v766_v57, %s841_s21 }
 0x301   : > { %v445_v62 = vpop.permute.xlu1 %444 }
 0x302   : > { %v447_v63 = vmul.f32 %v445_v62, %v428_v52 }
 0x304   : > { %449 = vrot.lane.b32.xlu2 %v447_v63, %s842_s20 }
 0x35e   : > { %v450_v4 = vpop.permute.xlu2 %449 }
 0x35f   : > { %452 = vst.msk [vmem:[%s1151_s8] sm:$0xff] %vm359_vm1, %v450_v4  ;;  %703 = vmatmul.msk.f32.vlgmr.msrb.gmra.mxu1 %vm359_vm1, %v450_v4 }
 0x360   : > { %454 = vst.msk [vmem:[%s1151_s8] sm:$0xff] %vm453_vm6, %v441_v56 }
 0x367   : > { %v455_v5 = vld [vmem:[%s1151_s8] sm:$0xff] }
 0x368   : > { %466 = vrot.lane.b32.xlu2 %v455_v5, %s841_s21 }
 0x3c2   : > { %v467_v6 = vpop.permute.xlu2 %466 }
 0x3c3   : > { %702 = vmatmul.msk.f32.vlgmr.msra.gmra.mxu3 %vm359_vm1, %v467_v6 }
 0x3dc   : > { %v509_v8 = vpop.f32.mrf.mxu1 }
 0x446   : > { %v487_v9 = vpop.f32.mrf.mxu3 }
 0x447   : > { %v510_v10 = vadd.f32 %v509_v8, %v487_v9 }
 0x449   : > { %v517_v11 = vadd.f32 %v757_v7, %v510_v10 }
 0x44b   : > { %767 = vtanh.f32 %v517_v11  ;;  %v705_v13 = vmul.f32 -1.442695, %v517_v11 }
 0x44d   : > { %769 = vpow2.f32 %v705_v13 }
 0x451   : > { %v768_v12 = vpop.eup %767 }
 0x452   : > { %541 = vrot.lane.b32.xlu0 %v768_v12, %s841_s21 }
 0x453   : > { %v770_v14 = vpop.eup %769 }
 0x454   : > { %v521_v15 = vadd.f32 1.0, %v770_v14 }
 0x456   : > { %771 = vrcp.f32 %v521_v15  ;;  %v533_v21 = vand.u32 2147483648, %v521_v15  ;;  %vm527_vm8 = vweird.f32 %v521_v15  ;;  %v531_v22 = vand.u32 2147483647, %v521_v15 }
 0x458   : > { %v534_v24 = vor.u32 1.1754944e-38, %v533_v21  ;;  %vm532_vm10 = vcmp.eq.f32.partialorder %v531_v22, 8.507059e+37 }
 0x45c   : > { %v772_v16 = vpop.eup %771 }
 0x45d   : > { %v523_v17 = vmul.f32 %v772_v16, %v521_v15  ;;  %vm528_vm7 = vweird.f32 %v772_v16 }
 0x45e   : > { %vm529_vm9 = vmor %vm527_vm8, %vm528_vm7 }
 0x45f   : > { %v524_v18 = vsub.f32 1.0, %v523_v17 }
 0x461   : > { %v525_v19 = vmul.f32 %v772_v16, %v524_v18 }
 0x463   : > { %v526_v20 = vadd.f32 %v772_v16, %v525_v19 }
 0x465   : > { %v530_v23 = vsel %vm529_vm9, %v772_v16, %v526_v20 }
 0x466   : > { %v535_v26 = vsel %vm532_vm10, %v534_v24, %v530_v23 }
 0x467   : > { %v539_v28 = vmul.f32 %v535_v26, %v467_v6 }
 0x4c4   : > { %v542_v25 = vpop.permute.xlu0 %541 }
 0x4c5   : > { %v544_v27 = vmul.f32 %v542_v25, %v535_v26 }
 0x4c7   : > { %546 = vrot.lane.b32.xlu1 %v544_v27, %s842_s20 }
 0x539   : > { %v547_v29 = vpop.permute.xlu1 %546 }
 0x53a   : > { %v549_v30 = vadd.f32 %v547_v29, %v539_v28 }
 0x53c   : > { %773 = vtanh.f32 %v549_v30 }
 0x542   : > { %v774_v31 = vpop.eup %773 }
 0x543   : > { %552 = vrot.lane.b32.xlu2 %v774_v31, %s841_s21 }
 0x54b   : > { %563 = vrot.lane.b32.xlu2 %v549_v30, %s841_s21  ;;  %s843_s21 = smov 96  }
 0x59d   : > { %v553_v36 = vpop.permute.xlu2 %552 }
 0x59e   : > { %v555_v37 = vmul.f32 %v553_v36, %v535_v26 }
 0x5a0   : > { %557 = vrot.lane.b32.xlu1 %v555_v37, %s843_s21  ;;  %576 = vrot.lane.b32.xlu0 %v555_v37, %s842_s20 }
 0x5a5   : > { %v564_v40 = vpop.permute.xlu2 %563 }
 0x612   : > { %v558_v38 = vpop.permute.xlu1 %557  ;;  %v577_v39 = vpop.permute.xlu0 %576 }
 0x613   : > { %561 = vst.msk [vmem:[%s1151_s8] sm:$0xff] %vm560_vm11, %v558_v38  ;;  %706 = vmatmul.msk.f32.vlgmr.msrb.gmra.mxu2 %vm359_vm1, %v577_v39 }
 0x614   : > { %567 = vst.msk [vmem:[%s1151_s8] sm:$0xff] %vm566_vm12, %v564_v40 }
 0x696   : > { %v597_v42 = vpop.f32.mrf.mxu2 }
 0x697   : > { %v598_v43 = vadd.f32 %v758_v41, %v597_v42 }
 0x699   : > { %600 = vst [vmem:[%s292_s24] sm:$0xff] %v598_v43 }
 0x69a   : > { %802 = shalt.err (!%p799_p4)
}
 0x69b   : > { %711 = dma.vmem_to_hbm [thread:$0]  (%p927_p5), %s615_s17, 128, %s617_s22, %s602_s26  }
 0x69c PF: > { %p717_p7 = scmp.ge.s32.totalorder %s837_s30, 2  ;;  %s634_s18 = sand.u32 1, %s825_s27  }
 0x69d   : > { %s635_s24 = scalar_lea.sflag [#allocation3], %s634_s18 }
 0x69e   : > { %p714_p8 = pnand %p717_p7, %p931_p6 }
 0x6a0   : > { %p715_p9 = pneg %p714_p8 }
 0x6a2   : > { %820 = dma.done.wait (%p715_p9), %s635_s24, 128  }
 0x6a3   : > { %822 = vsyncadd (%p715_p9), %s635_s24, 4294967168  ;;  %p19_p10 = scmp.ge.s32.totalorder %s914_s11, 10   ;;  %s1156_s27 = smov %s829_s28 }
 0x6a4   : > { %s1157_s28 = smov %s833_s29  ;;  %s1158_s29 = smov %s925_s14 }
 0x6a5   : > { %s1159_s30 = smov %s914_s11  ;;  %21 = sbr.rel (!%p19_p10) target bundleno = 3 (0x3), region = 97 }
 0x6aa   :  { %641 = vsyncpa [#allocation3], 1 }
 0x6ab   :  { %643 = vsyncpa [#allocation3 + $0x1], 1 }

</bundles_post_ra>
